<compile_context>
chip_gen: v5e
topology: v5e:2x2
jax: 0.10.0
libtpu: 0.0.40
codegen_flags: <defaults>
</compile_context>

<pallas_src>
import math
import jax
import jax.numpy as jnp
from jax.experimental import pallas as pl
from jax.experimental.pallas import tpu as pltpu


def _channel_att_kernel(im_ref, cv_ref, w1_ref, shift1_ref, w2_ref, b2_ref,
                        out_ref, gate_ref):
    # grid = (B, HW_tiles, D_tiles); D is the innermost ("arbitrary") axis.
    # The attention gate depends only on (b, hw-tile): compute it once at d == 0
    # and cache it in VMEM scratch for all subsequent D tiles.
    @pl.when(pl.program_id(2) == 0)
    def _():
        im = im_ref[0].astype(jnp.float32)                                    # [C_im, tHW]
        # conv1 (1x1, no bias) with the BN scale pre-folded into the weights.
        y1 = jnp.dot(w1_ref[...], im, preferred_element_type=jnp.float32)    # [C_mid, tHW]
        y1 = y1 + shift1_ref[...]                                             # BN shift
        y1 = jnp.where(y1 > 0, y1, 0.01 * y1)                                 # LeakyReLU(0.01)
        # conv2 (1x1, with bias)
        att = jnp.dot(w2_ref[...], y1, preferred_element_type=jnp.float32) + b2_ref[...]
        gate_ref[...] = jax.nn.sigmoid(att)                                   # [C_cv, tHW] f32

    cv = cv_ref[0].astype(jnp.float32)                                        # [C_cv, tD, tHW]
    out_ref[0] = (gate_ref[...][:, None, :] * cv).astype(out_ref.dtype)


def _vmem_budget():
    """Per-cv/out-tile byte budget and scoped-VMEM limit, per TPU generation."""
    vmem_bytes = 0
    try:
        info = pltpu.get_tpu_info()
        for name in ("vmem_capacity_bytes", "vmem_bytes", "vmem_size_bytes"):
            v = getattr(info, name, None)
            if v:
                vmem_bytes = int(v)
                break
    except Exception:
        vmem_bytes = 0
    if vmem_bytes >= (100 << 20):          # v5e / v6e: 128 MiB physical VMEM
        return 6 << 20, 64 << 20
    # v7x (64 MiB per TC) or unknown: stay conservative.
    return 3 << 20, 28 << 20


def _pick_tiles(HW, D, C_cv, itemsize, budget_bytes, min_hw_tiles=1):
    """Pick (tHW, tD).

    tHW: lane tile, a multiple of 128 not exceeding HW (or the full HW if HW < 128).
    tD : disparity tile, a multiple of 8 not exceeding D (or the full D).
    Maximizes the cv tile size within budget_bytes; when min_hw_tiles > 1 prefers
    splitting HW into at least that many tiles (v7x 2-TC balance).
    """
    if HW < 128:
        thw_cands = [HW]
    else:
        cap = min((HW // 128) * 128, 4096)
        thw_cands = list(range(cap, 0, -128))

    td_cands = [D] + list(range((D // 8) * 8, 0, -8))
    td_cands = [t for t in dict.fromkeys(td_cands) if 0 < t <= D]

    best = None   # (tile_bytes, tHW, tD)
    for thw in thw_cands:
        n_hw = -(-HW // thw)
        if n_hw < min_hw_tiles and thw > thw_cands[-1]:
            continue   # keep >= min_hw_tiles lane tiles unless this is the last option
        for td in td_cands:     # descending; first fit is the largest for this thw
            tile_bytes = C_cv * td * thw * itemsize
            if tile_bytes <= budget_bytes:
                if best is None or tile_bytes > best[0]:
                    best = (tile_bytes, thw, td)
                break
    if best is None:
        return thw_cands[-1], td_cands[-1]
    return best[1], best[2]


def channel_att(cv, im, w1, bn_gamma, bn_beta, bn_mean, bn_var, w2, b2,
                eps=1e-5, in_place=False):
    """cv: [B, C_cv, D, H, W], im: [B, C_im, H, W].  Output dtype follows cv."""
    B, C_cv, D, H, W = cv.shape
    _, C_im, _, _ = im.shape
    C_mid = w1.shape[0]
    HW = H * W
    itemsize = jnp.dtype(cv.dtype).itemsize

    tile_budget, vmem_limit = _vmem_budget()
    # On v7x (2 TCs) make sure B * n_hw >= 2 when B == 1; harmless on 1-TC chips.
    want_hw_tiles = 2 if (B == 1 and HW > 128) else 1
    tHW, tD = _pick_tiles(HW, D, C_cv, itemsize, tile_budget, want_hw_tiles)
    n_hw = pl.cdiv(HW, tHW)
    n_d = pl.cdiv(D, tD)

    # cv / out stay UNPADDED in HBM (partial boundary blocks are masked by Pallas).
    # Only im is padded (it is tiny) so the gate is finite on boundary lanes.
    cv_f = cv.reshape(B, C_cv, D, HW)
    im_f = im.reshape(B, C_im, HW)
    HW_im = n_hw * tHW
    if HW_im != HW:
        im_f = jnp.pad(im_f, ((0, 0), (0, 0), (0, HW_im - HW)))

    # Fold eval-mode BatchNorm: scale goes into the conv-1 weights, shift stays as bias.
    scale1 = (bn_gamma / jnp.sqrt(bn_var + eps)).astype(jnp.float32)
    w1_folded = (w1.astype(jnp.float32) * scale1[:, None])
    shift1 = (bn_beta - bn_mean * scale1).reshape(C_mid, 1).astype(jnp.float32)
    w2_f = w2.astype(jnp.float32)
    b2_col = b2.reshape(C_cv, 1).astype(jnp.float32)

    grid_spec = pltpu.PrefetchScalarGridSpec(
        num_scalar_prefetch=0,
        grid=(B, n_hw, n_d),
        in_specs=[
            # im: index_map constant over d -> fetched once per (b, hw-tile).
            pl.BlockSpec((1, C_im, tHW), lambda b, h, d: (b, 0, h)),
            pl.BlockSpec((1, C_cv, tD, tHW), lambda b, h, d: (b, 0, d, h)),
            pl.BlockSpec((C_mid, C_im), lambda b, h, d: (0, 0)),
            pl.BlockSpec((C_mid, 1), lambda b, h, d: (0, 0)),
            pl.BlockSpec((C_cv, C_mid), lambda b, h, d: (0, 0)),
            pl.BlockSpec((C_cv, 1), lambda b, h, d: (0, 0)),
        ],
        out_specs=pl.BlockSpec((1, C_cv, tD, tHW), lambda b, h, d: (b, 0, d, h)),
        scratch_shapes=[pltpu.VMEM((C_cv, tHW), jnp.float32)],
    )

    cost = pl.CostEstimate(
        flops=int(2 * B * HW_im * (C_mid * C_im + C_cv * C_mid) + B * C_cv * D * HW),
        transcendentals=int(B * C_cv * HW_im),
        bytes_accessed=int(2 * B * C_cv * D * HW * itemsize
                           + B * C_im * HW_im * jnp.dtype(im.dtype).itemsize),
    )

    out = pl.pallas_call(
        _channel_att_kernel,
        out_shape=jax.ShapeDtypeStruct((B, C_cv, D, HW), cv.dtype),
        grid_spec=grid_spec,
        compiler_params=pltpu.CompilerParams(
            dimension_semantics=("parallel", "parallel", "arbitrary"),
            vmem_limit_bytes=vmem_limit),
        cost_estimate=cost,
        input_output_aliases=({1: 0} if in_place else {}),
    )(im_f, cv_f, w1_folded, shift1, w2_f, b2_col)

    return out.reshape(B, C_cv, D, H, W)


def reference(cv, im, w1, bn_gamma, bn_beta, bn_mean, bn_var, w2, b2, eps=1e-5):
    # Plain-JAX reference of the PyTorch forward (1x1 convs as einsums), f32.
    y1 = jnp.einsum('oc,bchw->bohw', w1, im)
    y1 = (y1 - bn_mean[None, :, None, None]) / jnp.sqrt(bn_var[None, :, None, None] + eps)
    y1 = y1 * bn_gamma[None, :, None, None] + bn_beta[None, :, None, None]
    y1 = jnp.where(y1 > 0, y1, 0.01 * y1)
    att = jnp.einsum('oc,bchw->bohw', w2, y1) + b2[None, :, None, None]
    return jax.nn.sigmoid(att)[:, :, None, :, :] * cv


def _make_params(key, C_im, C_cv):
    C_mid = C_im // 2
    k_w1, k_w2, k_b2 = jax.random.split(key, 3)
    # Deterministic init following SubModule.weight_init (normal(0, sqrt(2/n))).
    w1 = jax.random.normal(k_w1, (C_mid, C_im), jnp.float32) * math.sqrt(2.0 / (1 * 1 * C_mid))
    w2 = jax.random.normal(k_w2, (C_cv, C_mid), jnp.float32) * math.sqrt(2.0 / (1 * 1 * C_cv))
    b2 = jax.random.normal(k_b2, (C_cv,), jnp.float32) * 0.01
    bn_gamma = jnp.ones((C_mid,), jnp.float32)
    bn_beta = jnp.zeros((C_mid,), jnp.float32)
    bn_mean = jnp.zeros((C_mid,), jnp.float32)
    bn_var = jnp.ones((C_mid,), jnp.float32)
    return w1, bn_gamma, bn_beta, bn_mean, bn_var, w2, b2


def _run_case(key, B, C_im, C_cv, D, H, W, dtype=jnp.float32, atol=1e-5, rtol=1e-5):
    k_cv, k_im, k_p = jax.random.split(key, 3)
    cv = jax.random.normal(k_cv, (B, C_cv, D, H, W), jnp.float32).astype(dtype)
    im = jax.random.normal(k_im, (B, C_im, H, W), jnp.float32).astype(dtype)
    params = _make_params(k_p, C_im, C_cv)

    out = jax.block_until_ready(channel_att(cv, im, *params))
    assert out.shape == (B, C_cv, D, H, W)
    assert out.dtype == dtype

    ref = reference(cv.astype(jnp.float32), im.astype(jnp.float32), *params)
    err = float(jnp.max(jnp.abs(out.astype(jnp.float32) - ref)))
    assert jnp.allclose(out.astype(jnp.float32), ref, atol=atol, rtol=rtol), err


if __name__ == "__main__":
    key = jax.random.PRNGKey(0)
    k1, k2, k3 = jax.random.split(key, 3)

    # Case 1: small shapes consistent with the module's forward (HW multiple of 128).
    _run_case(k1, B=2, C_im=16, C_cv=8, D=8, H=16, W=16)

    # Case 2: non-128-aligned H*W and B=1 -> exercises the unpadded partial-block
    # path (masked boundary store) and the >=2 HW-tile split for 2-TC balance.
    _run_case(k2, B=1, C_im=8, C_cv=4, D=12, H=10, W=20)

    # Case 3: bf16 cost volume / image streaming (gate math stays f32) -> half the
    # HBM bytes; tolerance loosened for the bf16 store rounding.
    _run_case(k3, B=1, C_im=16, C_cv=8, D=8, H=16, W=16,
              dtype=jnp.bfloat16, atol=3e-2, rtol=3e-2)

    print("KERNEL_OK")
</pallas_src>

<mosaic_0001>
module attributes {stable_mosaic.version = 11 : i64} {
  func.func @_channel_att_kernel(%arg0: i32, %arg1: i32, %arg2: i32, %arg3: memref<1x16x256xf32, #tpu.memory_space<vmem>>, %arg4: memref<1x8x8x256xf32, #tpu.memory_space<vmem>>, %arg5: memref<8x16xf32, #tpu.memory_space<vmem>>, %arg6: memref<8x1xf32, #tpu.memory_space<vmem>>, %arg7: memref<8x8xf32, #tpu.memory_space<vmem>>, %arg8: memref<8x1xf32, #tpu.memory_space<vmem>>, %arg9: memref<1x8x8x256xf32, #tpu.memory_space<vmem>>, %arg10: memref<8x256xf32, #tpu.memory_space<vmem>>) attributes {dimension_semantics = [#tpu.dimension_semantics<parallel>, #tpu.dimension_semantics<parallel>, #tpu.dimension_semantics<arbitrary>], iteration_bounds = array<i64: 2, 1, 1>, scalar_prefetch = 0 : i64, scratch_operands = 1 : i64, tpu.core_type = #tpu.core_type<tc>, window_params = [{transform_indices = @transform_0, window_bounds = array<i64: 1, 16, 256>}, {transform_indices = @transform_1, window_bounds = array<i64: 1, 8, 8, 256>}, {pipeline_mode = #tpu.pipeline_mode<synchronous>, transform_indices = @transform_2, window_bounds = array<i64: 8, 16>}, {pipeline_mode = #tpu.pipeline_mode<synchronous>, transform_indices = @transform_3, window_bounds = array<i64: 8, 1>}, {pipeline_mode = #tpu.pipeline_mode<synchronous>, transform_indices = @transform_4, window_bounds = array<i64: 8, 8>}, {pipeline_mode = #tpu.pipeline_mode<synchronous>, transform_indices = @transform_5, window_bounds = array<i64: 8, 1>}, {transform_indices = @transform_6, window_bounds = array<i64: 1, 8, 8, 256>}]} {
    %c0_i32 = arith.constant 0 : i32
    %0 = arith.cmpi eq, %arg2, %c0_i32 : i32
    %1 = arith.extui %0 : i1 to i32
    %c0_i32_0 = arith.constant 0 : i32
    %2 = arith.cmpi ne, %1, %c0_i32_0 : i32
    scf.if %2 {
      %c0_10 = arith.constant 0 : index
      %c0_11 = arith.constant 0 : index
      %c0_12 = arith.constant 0 : index
      %12 = vector.load %arg3[%c0_10, %c0_11, %c0_12] : memref<1x16x256xf32, #tpu.memory_space<vmem>>, vector<1x16x256xf32>
      %13 = vector.shape_cast %12 : vector<1x16x256xf32> to vector<16x256xf32>
      %c0_13 = arith.constant 0 : index
      %c0_14 = arith.constant 0 : index
      %14 = vector.load %arg5[%c0_13, %c0_14] : memref<8x16xf32, #tpu.memory_space<vmem>>, vector<8x16xf32>
      %cst = arith.constant dense<0.000000e+00> : vector<8x256xf32>
      %15 = tpu.matmul %14, %13, %cst {dimension_numbers = #tpu.dot_dimension_numbers<[1], [0], [0], [1], [0, 0, 1, 1], [], []>} : vector<8x16xf32>, vector<16x256xf32>, vector<8x256xf32> -> vector<8x256xf32>
      %c0_15 = arith.constant 0 : index
      %c0_16 = arith.constant 0 : index
      %16 = vector.load %arg6[%c0_15, %c0_16] : memref<8x1xf32, #tpu.memory_space<vmem>>, vector<8x1xf32>
      %17 = vector.broadcast %16 : vector<8x1xf32> to vector<8x256xf32>
      %18 = arith.addf %15, %17 : vector<8x256xf32>
      %cst_17 = arith.constant 0.000000e+00 : f32
      %19 = vector.broadcast %cst_17 : f32 to vector<8x256xf32>
      %20 = arith.cmpf ogt, %18, %19 : vector<8x256xf32>
      %cst_18 = arith.constant 0.00999999977 : f32
      %21 = vector.broadcast %cst_18 : f32 to vector<8x256xf32>
      %22 = arith.mulf %21, %18 : vector<8x256xf32>
      %23 = arith.select %20, %18, %22 : vector<8x256xi1>, vector<8x256xf32>
      %c0_19 = arith.constant 0 : index
      %c0_20 = arith.constant 0 : index
      %24 = vector.load %arg7[%c0_19, %c0_20] : memref<8x8xf32, #tpu.memory_space<vmem>>, vector<8x8xf32>
      %cst_21 = arith.constant dense<0.000000e+00> : vector<8x256xf32>
      %25 = tpu.matmul %24, %23, %cst_21 {dimension_numbers = #tpu.dot_dimension_numbers<[1], [0], [0], [1], [0, 0, 1, 1], [], []>} : vector<8x8xf32>, vector<8x256xf32>, vector<8x256xf32> -> vector<8x256xf32>
      %c0_22 = arith.constant 0 : index
      %c0_23 = arith.constant 0 : index
      %26 = vector.load %arg8[%c0_22, %c0_23] : memref<8x1xf32, #tpu.memory_space<vmem>>, vector<8x1xf32>
      %27 = vector.broadcast %26 : vector<8x1xf32> to vector<8x256xf32>
      %28 = arith.addf %25, %27 : vector<8x256xf32>
      %29 = arith.negf %28 : vector<8x256xf32>
      %30 = math.exp %29 : vector<8x256xf32>
      %cst_24 = arith.constant 1.000000e+00 : f32
      %31 = vector.broadcast %cst_24 : f32 to vector<8x256xf32>
      %32 = arith.addf %31, %30 : vector<8x256xf32>
      %33 = arith.divf %31, %32 : vector<8x256xf32>
      %c0_25 = arith.constant 0 : index
      %c0_26 = arith.constant 0 : index
      %34 = vector.load %arg10[%c0_25, %c0_26] : memref<8x256xf32, #tpu.memory_space<vmem>>, vector<8x256xf32>
      tpu.vector_store %arg10[%c0_25, %c0_26], %33 {strides = array<i32>} : memref<8x256xf32, #tpu.memory_space<vmem>>, vector<8x256xf32>,
    } else {
    }
    %c0 = arith.constant 0 : index
    %c0_1 = arith.constant 0 : index
    %c0_2 = arith.constant 0 : index
    %c0_3 = arith.constant 0 : index
    %3 = vector.load %arg4[%c0, %c0_1, %c0_2, %c0_3] : memref<1x8x8x256xf32, #tpu.memory_space<vmem>>, vector<1x8x8x256xf32>
    %4 = vector.shape_cast %3 : vector<1x8x8x256xf32> to vector<8x8x256xf32>
    %c0_4 = arith.constant 0 : index
    %c0_5 = arith.constant 0 : index
    %5 = vector.load %arg10[%c0_4, %c0_5] : memref<8x256xf32, #tpu.memory_space<vmem>>, vector<8x256xf32>
    %6 = vector.shape_cast %5 : vector<8x256xf32> to vector<8x1x256xf32>
    %7 = vector.broadcast %6 : vector<8x1x256xf32> to vector<8x8x256xf32>
    %8 = arith.mulf %7, %4 : vector<8x8x256xf32>
    %c0_6 = arith.constant 0 : index
    %c0_7 = arith.constant 0 : index
    %c0_8 = arith.constant 0 : index
    %c0_9 = arith.constant 0 : index
    %9 = vector.load %arg9[%c0_6, %c0_7, %c0_8, %c0_9] : memref<1x8x8x256xf32, #tpu.memory_space<vmem>>, vector<1x8x8x256xf32>
    %10 = vector.shape_cast %9 : vector<1x8x8x256xf32> to vector<8x8x256xf32>
    %11 = vector.shape_cast %8 : vector<8x8x256xf32> to vector<1x8x8x256xf32>
    tpu.vector_store %arg9[%c0_6, %c0_7, %c0_8, %c0_9], %11 {strides = array<i32>} : memref<1x8x8x256xf32, #tpu.memory_space<vmem>>, vector<1x8x8x256xf32>,
    return
  }
  func.func @transform_0(%arg0: i32, %arg1: i32, %arg2: i32) -> (i32, i32, i32) {
    %c0_i32 = arith.constant 0 : i32
    %c0_i32_0 = arith.constant 0 : i32
    return %arg0, %c0_i32, %arg1 : i32, i32, i32
  }
  func.func @transform_1(%arg0: i32, %arg1: i32, %arg2: i32) -> (i32, i32, i32, i32) {
    %c0_i32 = arith.constant 0 : i32
    %c0_i32_0 = arith.constant 0 : i32
    return %arg0, %c0_i32, %arg2, %arg1 : i32, i32, i32, i32
  }
  func.func @transform_2(%arg0: i32, %arg1: i32, %arg2: i32) -> (i32, i32) {
    %c0_i32 = arith.constant 0 : i32
    %c0_i32_0 = arith.constant 0 : i32
    %c0_i32_1 = arith.constant 0 : i32
    return %c0_i32, %c0_i32_0 : i32, i32
  }
  func.func @transform_3(%arg0: i32, %arg1: i32, %arg2: i32) -> (i32, i32) {
    %c0_i32 = arith.constant 0 : i32
    %c0_i32_0 = arith.constant 0 : i32
    %c0_i32_1 = arith.constant 0 : i32
    return %c0_i32, %c0_i32_0 : i32, i32
  }
  func.func @transform_4(%arg0: i32, %arg1: i32, %arg2: i32) -> (i32, i32) {
    %c0_i32 = arith.constant 0 : i32
    %c0_i32_0 = arith.constant 0 : i32
    %c0_i32_1 = arith.constant 0 : i32
    return %c0_i32, %c0_i32_0 : i32, i32
  }
  func.func @transform_5(%arg0: i32, %arg1: i32, %arg2: i32) -> (i32, i32) {
    %c0_i32 = arith.constant 0 : i32
    %c0_i32_0 = arith.constant 0 : i32
    %c0_i32_1 = arith.constant 0 : i32
    return %c0_i32, %c0_i32_0 : i32, i32
  }
  func.func @transform_6(%arg0: i32, %arg1: i32, %arg2: i32) -> (i32, i32, i32, i32) {
    %c0_i32 = arith.constant 0 : i32
    %c0_i32_0 = arith.constant 0 : i32
    return %arg0, %c0_i32, %arg2, %arg1 : i32, i32, i32, i32
  }
}

</mosaic_0001>

<bundles_post_ra>
// kernel: tpu_custom_call.1
= control target key start
LH: loop header
LB: loop body
LE: loop exit
PB: predicated region body
PF: predicated region fallthrough
CT: control target
= control target key end

     0   :  { %s1257_s0 = inlined_call_operand.hbm [shape: f32[2,16,256], index: 0, kind: input, shape index: {}]   ;;  %s1258_s1 = inlined_call_operand.hbm [shape: f32[2,8,8,256], index: 1, kind: input, shape index: {}]   ;;  %s1259_s2 = inlined_call_operand.vmem [shape: f32[8,16], index: 2, kind: input, shape index: {}]   ;;  %s1260_s3 = inlined_call_operand.vmem [shape: f32[8,1], index: 3, kind: input, shape index: {}]   ;;  %s1261_s4 = inlined_call_operand.vmem [shape: f32[8,8], index: 4, kind: input, shape index: {}]   ;;  %s1262_s5 = inlined_call_operand.vmem [shape: f32[8,1], index: 5, kind: input, shape index: {}]   ;;  %s1263_s6 = inlined_call_operand.hbm [shape: f32[2,8,8,256], index: 6, kind: output, shape index: {}]  }
   0x1   :  { %1266 = sst [smem:[#allocation15_spill]] %s1257_s0 }
   0x2   :  { %11 = vsyncpa [#allocation4], 0 }
   0x3   :  { %13 = vsyncpa [#allocation4 + $0x1], 0 }
   0x4   :  { %14 = vsyncpa [#allocation7], 0 }
   0x5   :  { %16 = vsyncpa [#allocation7 + $0x1], 0 }
   0x6   :  { %17 = vsyncpa [#allocation5], 0 }
   0x7   :  { %19 = vsyncpa [#allocation5 + $0x1], 0  ;;  %s1053_s21 = smov 0   ;;  %s1055_s22 = smov 0  }
   0x8   :  { %s1057_s23 = smov 0   ;;  %s1059_s24 = smov 0  }
   0x9   :  { %s1061_s25 = smov 0   ;;  %s1063_s26 = smov 0  }
   0xa LB: > { %1267 = sst [smem:[#allocation12_spill]] %s1007_s25  ;;  %s756_s27 = sadd.s32 4294967295, %s1011_s26   ;;  %s1011_s26 = sphi %s1063_s26, %s25_s26   ;;  %s1007_s25 = sphi %s1061_s25, %s1280_s25   ;;  %s1003_s24 = sphi %s1059_s24, %s1279_s24   ;;  %s999_s23 = sphi %s1057_s23, %s1283_s23   ;;  %s995_s22 = sphi %s1055_s22, %s1282_s22   ;;  %s991_s21 = sphi %s1053_s21, %s1281_s21  }
   0xb   : > { %s757_s28 = sadd.s32 4294967294, %s1011_s26   ;;  %s44_s29 = sadd.s32 1, %s1007_s25 }
   0xc   : > { %s53_s30 = sadd.s32 1, %s999_s23  ;;  %p46_p0 = scmp.ge.s32.totalorder %s44_s29, 2 }
   0xd   : > { %p60_p1 = scmp.ne.s32.totalorder %s999_s23, %s995_s22  ;;  %p61_p2 = scmp.eq.s32.totalorder %s1011_s26, 0 }
   0xe   : > { %p66_p3 = scmp.ne.s32.totalorder %s995_s22, %s991_s21  ;;  %s1285_s29 = smov (%p46_p0, %s44_s29), 0 }
   0xf   : > { %1268 = sst [smem:[#allocation13_spill]] %s1285_s29  ;;  %p1094_p4 = por %p61_p2, %p60_p1 }
  0x10   : > { %p67_p5 = scmp.eq.s32.totalorder %s756_s27, 0  ;;  %s48_s8 = ssub.s32 %s1007_s25, %s1285_s29 }
  0x11   : > { %p208_p6 = scmp.eq.s32.totalorder %s756_s27, 1  ;;  %p51_p7 = scmp.eq.s32.totalorder %s48_s8, 0 }
  0x12   : > { %p1100_p8 = por %p67_p5, %p66_p3  ;;  %p214_p10 = scmp.eq.s32.totalorder %s757_s28, 1 }
  0x13   : > { %p1104_p9 = por %p208_p6, %p60_p1  ;;  %p759_p12 = scmp.ge.s32.totalorder %s1011_s26, 2 }
  0x14   : > { %s1109_s11 = scalar_select %p51_p7, %s999_s23, %s53_s30  }
  0x15   : > { %p1111_p11 = por %p214_p10, %p66_p3  ;;  %p801_p13 = scmp.lt.s32.totalorder %s1011_s26, 2 }
  0x16   : > { %1272 = sst [smem:[#allocation14_spill]] %s1109_s11  ;;  %s1118_s13 = sand.u32 1, %s999_s23  }
  0x17   : > { %s760_s14 = sshll.u32 %s1118_s13, 5  ;;  %s781_s15 = sshll.u32 %s1007_s25, 5 }
  0x18   : > { %s1274_s0 = sld [smem:[#allocation15_spill]]  ;;  %s250_s19 = scalar_lea.vmem [#allocation3], %s760_s14 }
  0x19   : > { %s260_s20 = sshll.u32 %s250_s19, 4  ;;  %p1127_p0 = pnand %p801_p13, %p1094_p4  ;;  %s261_s20 = int_to_ptr.vmem [resolvable:$true] %s260_s20 }
  0x1a   : > { %p766_p1 = scmp.ge.s32.totalorder %s1011_s26, 1  ;;  %s247_s30 = scalar_lea.sflag [#allocation4], %s1118_s13 }
  0x1b   : > { %s1013_s8 = smov 256   ;;  %s1014_s29 = smov 16  }
  0x1c   : > { %p294_p2 = scmp.lt.s32.totalorder %s1011_s26, 3  ;;  %s763_s14 = sshll.u32 %s1118_s13, 7 }
  0x1d   : > { %s271_s11 = scalar_lea.sflag [#allocation7], %s1118_s13 }
  0x1e   : > { %s257_s18 = scalar_lea.hbm %s1274_s0, %s781_s15  ;;  %s782_s15 = sshll.u32 %s1007_s25, 7 }
  0x1f   : > { %s258_s27 = sshll.u32 %s257_s18, 4  ;;  %p295_p3 = pnand %p766_p1, %p294_p2  ;;  %s259_s27 = int_to_ptr.hbm [resolvable:$true] %s258_s27 }
  0x20   : > { %793 = dma.hbm_to_vmem [thread:$0]  (!%p1127_p0), %s259_s27, 512, %s261_s20, %s247_s30, %s1013_s8, %s1013_s8, %s1014_s29  }
  0x21   : > { %s283_s7 = scalar_lea.hbm %s1258_s1, %s782_s15  ;;  %s274_s18 = scalar_lea.vmem [#allocation6], %s763_s14 }
  0x22   : > { %s286_s19 = sshll.u32 %s274_s18, 4  ;;  %s284_s0 = sshll.u32 %s283_s7, 4  ;;  %s287_s19 = int_to_ptr.vmem [resolvable:$true] %s286_s19  ;;  %s285_s0 = int_to_ptr.hbm [resolvable:$true] %s284_s0 }
  0x23   : > { %796 = dma.hbm_to_vmem [thread:$0]  (!%p1127_p0), %s285_s0, 2048, %s287_s19, %s271_s11, %s1013_s8, %s1013_s8, %s1014_s29  }
  0x24   : > { %298 = sbr.rel (%p295_p3) target bundleno = 373 (0x175), region = 44  ;;  %s1145_s20 = sand.u32 (!%p295_p3), 1, %s995_s22  }
  0x25   : > { %s767_s27 = sshll.u32 (!%p295_p3), %s1145_s20, 5  ;;  %s301_s30 = scalar_lea.sflag (!%p295_p3), [#allocation4], %s1145_s20 }
  0x26   : > { %s304_s25 = scalar_lea.vmem (!%p295_p3), [#allocation3], %s767_s27 }
  0x29   : > { %978 = dma.done.wait (%p1100_p8), %s301_s30, 512  }
  0x2a   : > { %980 = vsyncadd (%p1100_p8), %s301_s30, 4294966784  ;;  %s768_s0 = sshll.u32 %s1145_s20, 7  ;;  %s311_s29 = scalar_lea.sflag [#allocation7], %s1145_s20 }
  0x2b   : > { %s1157_s11 = scalar_lea.vmem [#allocation6], %s768_s0 }
  0x2c   : > { %982 = dma.done.wait (%p1100_p8), %s311_s29, 2048  }
  0x2d   : > { %984 = vsyncadd (%p1100_p8), %s311_s29, 4294965248  ;;  %v1015_v0 = vmov 0   ;;  %v358_v1 = vld [vmem:[%s304_s25 + $0x10] sm:$0xff]  ;;  %v359_v2 = vld [vmem:[%s304_s25 + $0x18] sm:$0xff]  ;;  %vm367_vm0 = vcmask 130048   ;;  %vm424_vm3 = vcmask 64512  }
  0x2e   : > { %856 = vset.pattern.permute.xlu0 %v1015_v0  ;;  %v356_v3 = vld [vmem:[%s304_s25] sm:$0xff]  ;;  %385 = vmatpush.msra.mxu0 %v358_v1  ;;  %v357_v4 = vld [vmem:[%s304_s25 + $0x8] sm:$0xff]  ;;  %vm529_vm10 = vcmask 1040384   ;;  %vm531_vm12 = vcmask 1041409   ;;  %vm534_vm13 = vcmask 1042434   ;;  %vm537_vm14 = vcmask 1043459  }
  0x2f   : > { %405 = vmatpush.msra.mxu1 %v359_v2  ;;  %v360_v5 = vld [vmem:[%s1259_s2] sm:$0xff]  ;;  %v509_v1 = vld [vmem:[%s1157_s11 + $0x8] sm:$0xff]  ;;  %v510_v2 = vld [vmem:[%s1157_s11 + $0x10] sm:$0xff]  ;;  %s1192_s17 = scalar_lea.vmem [#allocation8], %s768_s0  ;;  %s783_s7 = sshll.u32 %s1003_s24, 7 }
  0x30   : > { %v361_v6 = vld [vmem:[%s1260_s3] sm:$0xff]  ;;  %386 = vmatpush.msra.mxu0 %v356_v3  ;;  %v511_v3 = vld [vmem:[%s1157_s11 + $0x18] sm:$0xff]  ;;  %s632_s19 = scalar_lea.hbm %s1263_s6, %s783_s7  ;;  %s633_s27 = sshll.u32 %s1192_s17, 4  ;;  %s634_s27 = int_to_ptr.vmem [resolvable:$true] %s633_s27 }
  0x31   : > { %364 = vperm.xlu0 %856, %v361_v6   ;;  %406 = vmatpush.msra.mxu1 %v357_v4  ;;  %v418_v7 = vld [vmem:[%s1262_s5] sm:$0xff]  ;;  %s635_s30 = sshll.u32 %s632_s19, 4  ;;  %s617_s0 = scalar_lea.sflag [#allocation5], %s1145_s20  ;;  %s636_s30 = int_to_ptr.hbm [resolvable:$true] %s635_s30 }
  0x32   : > { %770 = vmatmul.msk.f32.vlgmr.msra.gmra.mxu0 %vm367_vm0, %v360_v5  ;;  %771 = vmatmul.msk.f32.vlgmr.msra.gmra.mxu1 %vm367_vm0, %v360_v5  ;;  %v417_v15 = vld [vmem:[%s1261_s4] sm:$0xff]  ;;  %vm540_vm0 = vcmask 1044484   ;;  %s939_s29 = sshra.s32 %s636_s30, 4  ;;  %s945_s8 = scalar_lea.hbm %s1263_s6, 256  ;;  %s940_s29 = int_to_ptr.hbm [resolvable:$true] %s939_s29 }
  0x33   : > { %v508_v60 = vld [vmem:[%s1157_s11] sm:$0xff]  ;;  %p946_p7 = scmp.lt.s32.totalorder %s940_s29, %s1263_s6 }
  0x34   : > { %v512_v6 = vld [vmem:[%s1157_s11 + $0x20] sm:$0xff] }
  0x39   : > { %421 = vperm.xlu0 %856, %v418_v7  }
  0xa3   : > { %v365_v8 = vpop.permute.xlu0 %364 }
  0xab   : > { %v422_v18 = vpop.permute.xlu0 %421 }
  0xaf   : > { %v388_v9 = vpop.f32.mrf.mxu0  ;;  %v408_v10 = vpop.f32.mrf.mxu1 }
  0xb0   : > { %v389_v11 = vadd.f32 %v388_v9, %v365_v8  ;;  %v409_v12 = vadd.f32 %v408_v10, %v365_v8  ;;  %v513_v9 = vld [vmem:[%s1157_s11 + $0x28] sm:$0xff] }
  0xb2   : > { %vm411_vm1 = vcmp.gt.f32.partialorder %v389_v11, 0.0  ;;  %v413_v13 = vmul.f32 0.01, %v389_v11  ;;  %vm412_vm2 = vcmp.gt.f32.partialorder %v409_v12, 0.0  ;;  %v414_v14 = vmul.f32 0.01, %v409_v12 }
  0xb4   : > { %v415_v16 = vsel %vm411_vm1, %v389_v11, %v413_v13  ;;  %v416_v17 = vsel %vm412_vm2, %v409_v12, %v414_v14  ;;  %vm543_vm1 = vcmask 1045509   ;;  %vm546_vm2 = vcmask 1046534   ;;  %v514_v14 = vld [vmem:[%s1157_s11 + $0x30] sm:$0xff] }
  0xb5   : > { %443 = vmatpush.msra.mxu2 %v415_v16  ;;  %463 = vmatpush.msra.mxu3 %v416_v17 }
  0xb6   : > { %772 = vmatmul.msk.f32.vlgmr.msra.gmra.mxu2 %vm424_vm3, %v417_v15  ;;  %773 = vmatmul.msk.f32.vlgmr.msra.gmra.mxu3 %vm424_vm3, %v417_v15  ;;  %vm549_vm3 = vcmask 1046528  }
 0x139   : > { %v445_v19 = vpop.f32.mrf.mxu2  ;;  %v465_v20 = vpop.f32.mrf.mxu3 }
 0x13a   : > { %v446_v21 = vadd.f32 %v445_v19, %v422_v18  ;;  %v466_v22 = vadd.f32 %v465_v20, %v422_v18  ;;  %v515_v19 = vld [vmem:[%s1157_s11 + $0x38] sm:$0xff] }
 0x13c   : > { %v774_v23 = vmul.f32 -1.442695, %v446_v21  ;;  %v775_v24 = vmul.f32 -1.442695, %v466_v22 }
 0x13e   : > { %857 = vpow2.f32 %v774_v23  ;;  %v516_v23 = vld [vmem:[%s1157_s11 + $0x40] sm:$0xff] }
 0x13f   : > { %859 = vpow2.f32 %v775_v24 }
 0x144   : > { %v858_v25 = vpop.eup %857 }
 0x145   : > { %v860_v26 = vpop.eup %859  ;;  %v474_v27 = vadd.f32 1.0, %v858_v25 }
 0x146   : > { %v475_v28 = vadd.f32 1.0, %v860_v26  ;;  %v517_v26 = vld [vmem:[%s1157_s11 + $0x48] sm:$0xff] }
 0x147   : > { %861 = vrcp.f32 %v474_v27  ;;  %vm481_vm6 = vweird.f32 %v474_v27  ;;  %v487_v40 = vand.u32 2147483648, %v474_v27  ;;  %v485_v42 = vand.u32 2147483647, %v474_v27 }
 0x148   : > { %863 = vrcp.f32 %v475_v28  ;;  %v502_v36 = vand.u32 2147483648, %v475_v28  ;;  %v500_v38 = vand.u32 2147483647, %v475_v28  ;;  %vm496_vm8 = vweird.f32 %v475_v28 }
 0x149   : > { %v488_v47 = vor.u32 1.1754944e-38, %v487_v40  ;;  %vm486_vm15 = vcmp.eq.f32.partialorder %v485_v42, 8.507059e+37  ;;  %v522_v42 = vld [vmem:[%s1157_s11 + $0x70] sm:$0xff] }
 0x14a   : > { %v503_v44 = vor.u32 1.1754944e-38, %v502_v36  ;;  %vm501_vm11 = vcmp.eq.f32.partialorder %v500_v38, 8.507059e+37  ;;  %v520_v36 = vld [vmem:[%s1157_s11 + $0x60] sm:$0xff] }
 0x14d   : > { %v862_v29 = vpop.eup %861 }
 0x14e   : > { %v864_v30 = vpop.eup %863  ;;  %v477_v31 = vmul.f32 %v862_v29, %v474_v27  ;;  %vm482_vm4 = vweird.f32 %v862_v29 }
 0x14f   : > { %v492_v32 = vmul.f32 %v864_v30, %v475_v28  ;;  %vm497_vm5 = vweird.f32 %v864_v30  ;;  %vm1175_vm7 = vmor %vm481_vm6, %vm482_vm4 }
 0x150   : > { %v478_v33 = vsub.f32 1.0, %v477_v31  ;;  %vm498_vm9 = vmor %vm496_vm8, %vm497_vm5 }
 0x151   : > { %v493_v34 = vsub.f32 1.0, %v492_v32 }
 0x152   : > { %v479_v35 = vmul.f32 %v862_v29, %v478_v33  ;;  %v519_v33 = vld [vmem:[%s1157_s11 + $0x58] sm:$0xff] }
 0x153   : > { %v494_v37 = vmul.f32 %v864_v30, %v493_v34 }
 0x154   : > { %v480_v39 = vadd.f32 %v862_v29, %v479_v35 }
 0x155   : > { %v495_v43 = vadd.f32 %v864_v30, %v494_v37 }
 0x156   : > { %v484_v45 = vsel %vm1175_vm7, %v862_v29, %v480_v39  ;;  %v521_v39 = vld [vmem:[%s1157_s11 + $0x68] sm:$0xff] }
 0x157   : > { %v499_v46 = vsel %vm498_vm9, %v864_v30, %v495_v43  ;;  %v489_v50 = vsel %vm486_vm15, %v488_v47, %v484_v45  ;;  %v518_v30 = vld [vmem:[%s1157_s11 + $0x50] sm:$0xff]  ;;  %v523_v45 = vld [vmem:[%s1157_s11 + $0x78] sm:$0xff]  ;;  %s941_s11 = scalar_lea.hbm %s940_s29, 128 }
 0x158   : > { %v504_v48 = vsel %vm501_vm11, %v503_v44, %v499_v46  ;;  %p942_p4 = scmp.ne.s32.totalorder %s940_s29, %s941_s11  ;;  %p947_p8 = scmp.lt.s32.totalorder %s945_s8, %s941_s11 }
 0x159   : > { %v528_v49 = vrot.slane %v504_v48, 7 }
 0x15a   : > { %p943_p5 = pnand %p942_p4, %p1104_p9  ;;  %p948_p10 = por %p947_p8, %p946_p7 }
 0x15b   : > { %v530_v51 = vsel %vm529_vm10, %v489_v50, %v528_v49  ;;  %v532_v52 = vsel %vm531_vm12, %v489_v50, %v528_v49  ;;  %v535_v53 = vsel %vm534_vm13, %v489_v50, %v528_v49  ;;  %v538_v54 = vsel %vm537_vm14, %v489_v50, %v528_v49 }
 0x15c   : > { %v533_v55 = vrot.slane %v532_v52, 1  ;;  %v536_v56 = vrot.slane %v535_v53, 2  ;;  %v541_v57 = vsel %vm540_vm0, %v489_v50, %v528_v49  ;;  %v539_v58 = vrot.slane %v538_v54, 3  ;;  %p944_p6 = pneg %p943_p5 }
 0x15d   : > { %v552_v59 = vperm.slane %v530_v51, 0  ;;  %v544_v61 = vsel %vm543_vm1, %v489_v50, %v528_v49  ;;  %v553_v62 = vperm.slane %v530_v51, 1  ;;  %v542_v4 = vrot.slane %v541_v57, 4 }
 0x15e   : > { %v554_v63 = vperm.slane %v533_v55, 0  ;;  %v555_v0 = vperm.slane %v533_v55, 1  ;;  %v556_v5 = vperm.slane %v536_v56, 0  ;;  %v547_v7 = vsel %vm546_vm2, %v489_v50, %v528_v49  ;;  %p949_p13 = pnand %p948_p10, %p944_p6 }
 0x15f   : > { %v557_v8 = vperm.slane %v536_v56, 1  ;;  %v545_v10 = vrot.slane %v544_v61, 5  ;;  %v550_v11 = vsel %vm549_vm3, %v528_v49, %v489_v50  ;;  %v558_v12 = vperm.slane %v539_v58, 0 }
 0x160   : > { %v584_v13 = vmul.f32 %v552_v59, %v508_v60  ;;  %v559_v15 = vperm.slane %v539_v58, 1  ;;  %v585_v16 = vmul.f32 %v553_v62, %v509_v1  ;;  %v586_v17 = vmul.f32 %v554_v63, %v510_v2 }
 0x161   : > { %v587_v18 = vmul.f32 %v555_v0, %v511_v3  ;;  %v548_v20 = vrot.slane %v547_v7, 6  ;;  %v560_v21 = vperm.slane %v542_v4, 0  ;;  %v588_v22 = vmul.f32 %v556_v5, %v512_v6 }
 0x162   : > { %600 = vst [vmem:[%s1192_s17] sm:$0xff] %v584_v13  ;;  %v561_v24 = vperm.slane %v542_v4, 1  ;;  %v589_v25 = vmul.f32 %v557_v8, %v513_v9  ;;  %v551_v27 = vrot.slane %v550_v11, 7  ;;  %v562_v28 = vperm.slane %v545_v10, 0 }
 0x163   : > { %601 = vst [vmem:[%s1192_s17 + $0x8] sm:$0xff] %v585_v16  ;;  %v590_v29 = vmul.f32 %v558_v12, %v514_v14  ;;  %v563_v31 = vperm.slane %v545_v10, 1  ;;  %v591_v32 = vmul.f32 %v559_v15, %v515_v19  ;;  %v564_v34 = vperm.slane %v548_v20, 0 }
 0x164   : > { %602 = vst [vmem:[%s1192_s17 + $0x10] sm:$0xff] %v586_v17  ;;  %v592_v35 = vmul.f32 %v560_v21, %v516_v23  ;;  %v565_v37 = vperm.slane %v548_v20, 1  ;;  %v593_v38 = vmul.f32 %v561_v24, %v517_v26  ;;  %v566_v40 = vperm.slane %v551_v27, 0 }
 0x165   : > { %603 = vst [vmem:[%s1192_s17 + $0x18] sm:$0xff] %v587_v18  ;;  %v594_v41 = vmul.f32 %v562_v28, %v518_v30  ;;  %v567_v43 = vperm.slane %v551_v27, 1  ;;  %v595_v44 = vmul.f32 %v563_v31, %v519_v33  ;;  %v596_v46 = vmul.f32 %v564_v34, %v520_v36 }
 0x166   : > { %604 = vst [vmem:[%s1192_s17 + $0x20] sm:$0xff] %v588_v22  ;;  %v597_v47 = vmul.f32 %v565_v37, %v521_v39  ;;  %v598_v48 = vmul.f32 %v566_v40, %v522_v42 }
 0x167   : > { %605 = vst [vmem:[%s1192_s17 + $0x28] sm:$0xff] %v589_v25  ;;  %v599_v49 = vmul.f32 %v567_v43, %v523_v45 }
 0x168   : > { %606 = vst [vmem:[%s1192_s17 + $0x30] sm:$0xff] %v590_v29 }
 0x169   : > { %607 = vst [vmem:[%s1192_s17 + $0x38] sm:$0xff] %v591_v32 }
 0x16a   : > { %608 = vst [vmem:[%s1192_s17 + $0x40] sm:$0xff] %v592_v35 }
 0x16b   : > { %609 = vst [vmem:[%s1192_s17 + $0x48] sm:$0xff] %v593_v38 }
 0x16c   : > { %610 = vst [vmem:[%s1192_s17 + $0x50] sm:$0xff] %v594_v41 }
 0x16d   : > { %611 = vst [vmem:[%s1192_s17 + $0x58] sm:$0xff] %v595_v44 }
 0x16e   : > { %612 = vst [vmem:[%s1192_s17 + $0x60] sm:$0xff] %v596_v46 }
 0x16f   : > { %613 = vst [vmem:[%s1192_s17 + $0x68] sm:$0xff] %v597_v47 }
 0x170   : > { %614 = vst [vmem:[%s1192_s17 + $0x70] sm:$0xff] %v598_v48 }
 0x171   : > { %615 = vst [vmem:[%s1192_s17 + $0x78] sm:$0xff] %v599_v49 }
 0x172   : > { %952 = shalt.err (!%p949_p13)
}
 0x173   : > { %s1016_s20 = smov 256   ;;  %s1017_s15 = smov 16  }
 0x174   : > { %788 = dma.vmem_to_hbm [thread:$0]  (%p1104_p9), %s634_s27, 2048, %s636_s30, %s617_s0, %s1016_s20, %s1016_s20, %s1017_s15  }
 0x175 PF: > { %s650_s25 = sand.u32 1, %s991_s21   ;;  %p798_p0 = pnand %p759_p12, %p1111_p11 }
 0x176   : > { %s651_s16 = scalar_lea.sflag [#allocation5], %s650_s25 }
 0x177   : > { %p799_p1 = pneg %p798_p0 }
 0x179   : > { %986 = dma.done.wait (%p799_p1), %s651_s16, 2048  }
 0x17a   : > { %988 = vsyncadd (%p799_p1), %s651_s16, 4294965248  ;;  %s25_s26 = sadd.s32 1, %s1011_s26   ;;  %s1278_s17 = sld [smem:[#allocation14_spill]] }
 0x17b   : > { %p22_p2 = scmp.ge.s32.totalorder %s25_s26, 4   ;;  %s1279_s24 = sld [smem:[#allocation12_spill]] }
 0x17c   : > { %s1280_s25 = sld [smem:[#allocation13_spill]]  ;;  %s1281_s21 = smov %s995_s22 }
 0x17d   : > { %s1282_s22 = smov %s999_s23  ;;  %24 = sbr.rel (!%p22_p2) target bundleno = 10 (0xa), region = 106 }
 0x180   : > { %s1283_s23 = smov %s1278_s17 }
 0x182   :  { %657 = vsyncpa [#allocation4], 1 }
 0x183   :  { %659 = vsyncpa [#allocation4 + $0x1], 1 }
 0x184   :  { %660 = vsyncpa [#allocation7], 1 }
 0x185   :  { %662 = vsyncpa [#allocation7 + $0x1], 1 }
 0x186   :  { %663 = vsyncpa [#allocation5], 1 }
 0x187   :  { %665 = vsyncpa [#allocation5 + $0x1], 1 }

</bundles_post_ra>
